<compile_context>
chip_gen: v6e
topology: v6e:2x2x1
jax: 0.10.0
libtpu: 0.0.40
codegen_flags: <defaults>
</compile_context>

<pallas_src>
import functools
import math

import jax
import jax.numpy as jnp
import numpy as np
from jax import lax
from jax.experimental import pallas as pl
from jax.experimental.pallas import tpu as pltpu


def _flash_qkv_kernel(q_ref, k_ref, v_ref, o_ref, m_sc, l_sc, acc_sc, q_sc,
                      *, ch, seq_len, tk, kv_mask, cache_q,
                      compute_dtype, exp_dtype):
    """One grid step = one (batch-group, q-tile, kv-tile).

    q_ref : (gb, ch, tq)   k_ref / v_ref : (gb, ch, tk)   o_ref : (gb, ch, tq)
    m_sc / l_sc : (gb, tq, 1) f32 running max / denominator
    acc_sc      : (gb, tq, ch) f32 running numerator (q-major so the PV matmul
                  never relays out the large (tq, tk) probability tile)
    q_sc        : (gb, ch, tq) cached pre-scaled q (used only when nk > 1)
    """
    ki = pl.program_id(2)
    scale = 1.0 / math.sqrt(ch)   # == sqrt(sqrt(ch)) applied to both q and k

    @pl.when(ki == 0)
    def _init():
        m_sc[...] = jnp.full(m_sc.shape, -jnp.inf, dtype=m_sc.dtype)
        l_sc[...] = jnp.zeros(l_sc.shape, dtype=l_sc.dtype)
        acc_sc[...] = jnp.zeros(acc_sc.shape, dtype=acc_sc.dtype)
        if cache_q:
            q_sc[...] = (q_ref[...] * scale).astype(compute_dtype)

    if cache_q:
        q = q_sc[...]                                       # scaled once/q-tile
    else:
        q = (q_ref[...] * scale).astype(compute_dtype)
    k = k_ref[...].astype(compute_dtype)
    v = v_ref[...].astype(compute_dtype)

    # s[g, t, u] = sum_c q[g, c, t] * k[g, c, u]   (f32 accumulation on MXU)
    s = lax.dot_general(q, k, (((1,), (1,)), ((0,), (0,))),
                        preferred_element_type=jnp.float32)  # (gb, tq, tk)

    def update(s_blk, v_blk):
        m_prev = m_sc[...]                                   # (gb, tq, 1)
        m_new = jnp.maximum(m_prev, jnp.max(s_blk, axis=-1, keepdims=True))
        alpha = jnp.exp(m_prev - m_new)                      # (gb, tq, 1) f32
        p = jnp.exp((s_blk - m_new).astype(exp_dtype))       # (gb, tq, tk)
        l_sc[...] = alpha * l_sc[...] + jnp.sum(
            p, axis=-1, keepdims=True, dtype=jnp.float32)
        # pv[g, t, c] = sum_u p[g, t, u] * v[g, c, u] -> only small v relaid out
        pv = lax.dot_general(p.astype(v_blk.dtype), v_blk,
                             (((2,), (2,)), ((0,), (0,))),
                             preferred_element_type=jnp.float32)  # (gb, tq, ch)
        acc_sc[...] = alpha * acc_sc[...] + pv
        m_sc[...] = m_new

    if kv_mask:   # static: only when T is not a multiple of tk
        last = pl.num_programs(2) - 1

        @pl.when(ki < last)            # full tiles: no masking work at all
        def _full():
            update(s, v)

        @pl.when(ki == last)           # ragged tail: mask scores + zero v
        def _tail():
            col = ki * tk + lax.broadcasted_iota(jnp.int32, s.shape, 2)
            s_m = jnp.where(col < seq_len, s, -jnp.inf)
            vcol = ki * tk + lax.broadcasted_iota(jnp.int32, v.shape, 2)
            v_m = jnp.where(vcol < seq_len, v, jnp.zeros_like(v))
            update(s_m, v_m)
    else:
        update(s, v)

    @pl.when(ki == pl.num_programs(2) - 1)
    def _finalize():
        l = l_sc[...]
        r = pl.reciprocal(l, approx=True)        # EUP slot
        r = r * (2.0 - l * r)                    # one Newton step -> ~f32 exact
        o = (acc_sc[...] * r).astype(o_ref.dtype)            # cast BEFORE transpose
        o_ref[...] = jnp.transpose(o, (0, 2, 1))             # lane-dense (ch, tq)


def _largest_divisor_le(n, cap):
    cap = max(1, min(n, cap))
    best = 1
    for d in range(1, cap + 1):
        if n % d == 0:
            best = d
    return best


def qkv_attention(qkv, n_heads, *, tq=None, tk=None, gb=None, mxu_bf16=False):
    """Pallas equivalent of QKVAttention.forward(qkv) (aux_kv=None path).

    qkv: [N, H * 3 * C, T]  ->  [N, H * C, T]
    """
    # TODO(synk): aux_kv (extra cross-attention k/v concat) path not implemented.
    N, width, T = qkv.shape
    assert width % (3 * n_heads) == 0
    ch = width // (3 * n_heads)
    B = N * n_heads
    qkv_r = qkv.reshape(B, 3, ch, T)   # per-head [q|k|v] split at BlockSpec level

    kind = ""
    try:
        kind = jax.devices()[0].device_kind.lower()
    except Exception:
        pass
    is_v5 = "v5" in kind

    # Tile policy: full extent when small, else large multiples of 128 so the
    # per-grid-step overhead and per-q-tile K/V HBM re-reads amortise.
    if tq is None:
        tq = T if T <= 512 else 512
    if tk is None:
        tk_cap = 256 if is_v5 else 1024      # v5e: narrower MXU, f32 softmax
        tk = T if T <= tk_cap else tk_cap
    assert tq == T or tq % 128 == 0
    assert tk == T or tk % 128 == 0
    nq = pl.cdiv(T, tq)
    nk = pl.cdiv(T, tk)
    kv_mask = (T % tk) != 0
    cache_q = nk > 1                          # only worth caching if q is reused

    # Small-T: group several (batch*head) slices per grid step.
    if gb is None:
        if T < 128 and nq == 1 and nk == 1:
            gb = _largest_divisor_le(B, max(1, 512 // max(T, 1)))
        else:
            gb = 1
    assert B % gb == 0

    compute_dtype = qkv.dtype
    if mxu_bf16 and qkv.dtype == jnp.float32:
        compute_dtype = jnp.bfloat16          # opt-in: bf16 MXU with f32 acc
    exp_dtype = (jnp.bfloat16
                 if (compute_dtype == jnp.bfloat16 and not is_v5)
                 else jnp.float32)            # no bf16 EUP on v5e

    itemsize = jnp.dtype(qkv.dtype).itemsize
    cbytes = jnp.dtype(compute_dtype).itemsize
    est = (2 * gb * ch * (tq + 2 * tk) * itemsize   # double-buffered q, k, v
           + 2 * gb * ch * tq * itemsize            # double-buffered output
           + gb * (2 * tq + tq * ch) * 4            # m / l / acc scratch (f32)
           + gb * ch * tq * cbytes                  # cached scaled q
           + 4 * gb * tq * tk * 4)                  # s / p intermediates (f32)
    # Cap below v7x's 64 MiB/TC VMEM to leave compiler scratch headroom.
    vmem_limit = int(min(max(2 * est, 32 * 1024 * 1024), 48 * 1024 * 1024))

    kernel = functools.partial(
        _flash_qkv_kernel, ch=ch, seq_len=T, tk=tk, kv_mask=kv_mask,
        cache_q=cache_q, compute_dtype=compute_dtype, exp_dtype=exp_dtype)

    cost = pl.CostEstimate(
        flops=4 * B * T * T * ch,
        transcendentals=B * T * T,
        bytes_accessed=int((qkv.size + B * ch * T) * itemsize))

    out = pl.pallas_call(
        kernel,
        out_shape=jax.ShapeDtypeStruct((B, ch, T), qkv.dtype),
        grid_spec=pltpu.PrefetchScalarGridSpec(
            num_scalar_prefetch=0,
            grid=(B // gb, nq, nk),
            in_specs=[
                pl.BlockSpec((gb, None, ch, tq),
                             lambda b, qi, ki: (b, 0, 0, qi)),   # q
                pl.BlockSpec((gb, None, ch, tk),
                             lambda b, qi, ki: (b, 1, 0, ki)),   # k
                pl.BlockSpec((gb, None, ch, tk),
                             lambda b, qi, ki: (b, 2, 0, ki)),   # v
            ],
            out_specs=pl.BlockSpec((gb, ch, tq),
                                   lambda b, qi, ki: (b, 0, qi)),
            scratch_shapes=[
                pltpu.VMEM((gb, tq, 1), jnp.float32),      # running max
                pltpu.VMEM((gb, tq, 1), jnp.float32),      # running denominator
                pltpu.VMEM((gb, tq, ch), jnp.float32),     # running numerator
                pltpu.VMEM((gb, ch, tq), compute_dtype),   # cached scaled q
            ],
        ),
        compiler_params=pltpu.CompilerParams(
            dimension_semantics=("parallel", "parallel", "arbitrary"),
            vmem_limit_bytes=vmem_limit,
        ),
        cost_estimate=cost,
    )(qkv_r, qkv_r, qkv_r)

    return out.reshape(N, n_heads * ch, T)


def _qkv_attention_ref(qkv, n_heads):
    """Pure-JAX reference mirroring the PyTorch forward, for validation."""
    N, width, T = qkv.shape
    ch = width // (3 * n_heads)
    B = N * n_heads
    qkv_r = qkv.reshape(B, 3, ch, T)
    q, k, v = qkv_r[:, 0], qkv_r[:, 1], qkv_r[:, 2]
    scale = 1.0 / math.sqrt(math.sqrt(ch))
    w = jnp.einsum('bct,bcs->bts', q * scale, k * scale)
    w = jax.nn.softmax(w.astype(jnp.float32), axis=-1).astype(qkv.dtype)
    a = jnp.einsum('bts,bcs->bct', w, v)
    return a.reshape(N, n_heads * ch, T)


if __name__ == "__main__":
    key = jax.random.PRNGKey(0)
    k1, k2, k3 = jax.random.split(key, 3)

    # Case 1: small single-tile f32 (N=2, H=2, C=8, T=16) -> batch-grouped path.
    N, H, C, T = 2, 2, 8, 16
    qkv = jax.random.normal(k1, (N, H * 3 * C, T), dtype=jnp.float32)
    out = jax.block_until_ready(qkv_attention(qkv, n_heads=H))
    ref = _qkv_attention_ref(qkv, n_heads=H)
    assert out.shape == (N, H * C, T), out.shape
    np.testing.assert_allclose(np.asarray(out), np.asarray(ref),
                               rtol=2e-3, atol=2e-3)

    # Case 2: multi-q-tile flash path (f32, T=640, C=64) with default tiles.
    N2, H2, C2, T2 = 1, 2, 64, 640
    qkv2 = jax.random.normal(k2, (N2, H2 * 3 * C2, T2), dtype=jnp.float32)
    out2 = jax.block_until_ready(qkv_attention(qkv2, n_heads=H2))
    ref2 = _qkv_attention_ref(qkv2, n_heads=H2)
    np.testing.assert_allclose(np.asarray(out2), np.asarray(ref2),
                               rtol=2e-3, atol=2e-3)

    # Case 2b: force multi-kv-tile + ragged tail + cached-q path.
    out2b = jax.block_until_ready(
        qkv_attention(qkv2, n_heads=H2, tq=256, tk=256))
    np.testing.assert_allclose(np.asarray(out2b), np.asarray(ref2),
                               rtol=2e-3, atol=2e-3)

    # Case 3: bf16 operands stay bf16 into the MXU (bf16 exp on v6e/v7x).
    qkv3 = jax.random.normal(k3, (N, H * 3 * C, T),
                             dtype=jnp.float32).astype(jnp.bfloat16)
    out3 = jax.block_until_ready(qkv_attention(qkv3, n_heads=H))
    ref3 = _qkv_attention_ref(qkv3, n_heads=H)
    np.testing.assert_allclose(np.asarray(out3, dtype=np.float32),
                               np.asarray(ref3, dtype=np.float32),
                               rtol=5e-2, atol=5e-2)

    print("KERNEL_OK")
</pallas_src>

<mosaic_0001>
module attributes {stable_mosaic.version = 11 : i64} {
  func.func @_flash_qkv_kernel(%arg0: i32, %arg1: i32, %arg2: i32, %arg3: memref<4x1x8x16xf32, #tpu.memory_space<vmem>>, %arg4: memref<4x1x8x16xf32, #tpu.memory_space<vmem>>, %arg5: memref<4x1x8x16xf32, #tpu.memory_space<vmem>>, %arg6: memref<4x8x16xf32, #tpu.memory_space<vmem>>, %arg7: memref<4x16x1xf32, #tpu.memory_space<vmem>>, %arg8: memref<4x16x1xf32, #tpu.memory_space<vmem>>, %arg9: memref<4x16x8xf32, #tpu.memory_space<vmem>>, %arg10: memref<4x8x16xf32, #tpu.memory_space<vmem>>) attributes {dimension_semantics = [#tpu.dimension_semantics<parallel>, #tpu.dimension_semantics<parallel>, #tpu.dimension_semantics<arbitrary>], iteration_bounds = array<i64: 1, 1, 1>, scalar_prefetch = 0 : i64, scratch_operands = 4 : i64, tpu.core_type = #tpu.core_type<tc>, window_params = [{transform_indices = @transform_0, window_bounds = array<i64: 4, 1, 8, 16>}, {transform_indices = @transform_1, window_bounds = array<i64: 4, 1, 8, 16>}, {transform_indices = @transform_2, window_bounds = array<i64: 4, 1, 8, 16>}, {transform_indices = @transform_3, window_bounds = array<i64: 4, 8, 16>}]} {
    %c0_i32 = arith.constant 0 : i32
    %0 = arith.cmpi eq, %arg2, %c0_i32 : i32
    %1 = arith.extui %0 : i1 to i32
    %c0_i32_0 = arith.constant 0 : i32
    %2 = arith.cmpi ne, %1, %c0_i32_0 : i32
    scf.if %2 {
      %cst_36 = arith.constant 0xFF800000 : f32
      %37 = vector.broadcast %cst_36 : f32 to vector<4x16x1xf32>
      %c0_37 = arith.constant 0 : index
      %c0_38 = arith.constant 0 : index
      %c0_39 = arith.constant 0 : index
      %38 = vector.load %arg7[%c0_37, %c0_38, %c0_39] : memref<4x16x1xf32, #tpu.memory_space<vmem>>, vector<4x16x1xf32>
      tpu.vector_store %arg7[%c0_37, %c0_38, %c0_39], %37 {strides = array<i32>} : memref<4x16x1xf32, #tpu.memory_space<vmem>>, vector<4x16x1xf32>,
      %cst_40 = arith.constant 0.000000e+00 : f32
      %39 = vector.broadcast %cst_40 : f32 to vector<4x16x1xf32>
      %c0_41 = arith.constant 0 : index
      %c0_42 = arith.constant 0 : index
      %c0_43 = arith.constant 0 : index
      %40 = vector.load %arg8[%c0_41, %c0_42, %c0_43] : memref<4x16x1xf32, #tpu.memory_space<vmem>>, vector<4x16x1xf32>
      tpu.vector_store %arg8[%c0_41, %c0_42, %c0_43], %39 {strides = array<i32>} : memref<4x16x1xf32, #tpu.memory_space<vmem>>, vector<4x16x1xf32>,
      %cst_44 = arith.constant 0.000000e+00 : f32
      %41 = vector.broadcast %cst_44 : f32 to vector<4x16x8xf32>
      %c0_45 = arith.constant 0 : index
      %c0_46 = arith.constant 0 : index
      %c0_47 = arith.constant 0 : index
      %42 = vector.load %arg9[%c0_45, %c0_46, %c0_47] : memref<4x16x8xf32, #tpu.memory_space<vmem>>, vector<4x16x8xf32>
      tpu.vector_store %arg9[%c0_45, %c0_46, %c0_47], %41 {strides = array<i32>} : memref<4x16x8xf32, #tpu.memory_space<vmem>>, vector<4x16x8xf32>,
    } else {
    }
    %c0 = arith.constant 0 : index
    %c0_1 = arith.constant 0 : index
    %c0_2 = arith.constant 0 : index
    %c0_3 = arith.constant 0 : index
    %3 = vector.load %arg3[%c0, %c0_1, %c0_2, %c0_3] : memref<4x1x8x16xf32, #tpu.memory_space<vmem>>, vector<4x1x8x16xf32>
    %4 = vector.shape_cast %3 : vector<4x1x8x16xf32> to vector<4x8x16xf32>
    %cst = arith.constant 0.353553385 : f32
    %5 = vector.broadcast %cst : f32 to vector<4x8x16xf32>
    %6 = arith.mulf %4, %5 : vector<4x8x16xf32>
    %c0_4 = arith.constant 0 : index
    %c0_5 = arith.constant 0 : index
    %c0_6 = arith.constant 0 : index
    %c0_7 = arith.constant 0 : index
    %7 = vector.load %arg4[%c0_4, %c0_5, %c0_6, %c0_7] : memref<4x1x8x16xf32, #tpu.memory_space<vmem>>, vector<4x1x8x16xf32>
    %8 = vector.shape_cast %7 : vector<4x1x8x16xf32> to vector<4x8x16xf32>
    %c0_8 = arith.constant 0 : index
    %c0_9 = arith.constant 0 : index
    %c0_10 = arith.constant 0 : index
    %c0_11 = arith.constant 0 : index
    %9 = vector.load %arg5[%c0_8, %c0_9, %c0_10, %c0_11] : memref<4x1x8x16xf32, #tpu.memory_space<vmem>>, vector<4x1x8x16xf32>
    %10 = vector.shape_cast %9 : vector<4x1x8x16xf32> to vector<4x8x16xf32>
    %cst_12 = arith.constant dense<0.000000e+00> : vector<4x16x16xf32>
    %11 = tpu.matmul %6, %8, %cst_12 {dimension_numbers = #tpu.dot_dimension_numbers<[1], [1], [2], [2], [0, 0, 0, 2, 1, 2], [0], [0]>} : vector<4x8x16xf32>, vector<4x8x16xf32>, vector<4x16x16xf32> -> vector<4x16x16xf32>
    %c0_13 = arith.constant 0 : index
    %c0_14 = arith.constant 0 : index
    %c0_15 = arith.constant 0 : index
    %12 = vector.load %arg7[%c0_13, %c0_14, %c0_15] : memref<4x16x1xf32, #tpu.memory_space<vmem>>, vector<4x16x1xf32>
    %cst_16 = arith.constant dense<0xFF800000> : vector<4x16xf32>
    %13 = vector.multi_reduction <maximumf>, %11, %cst_16 [2] : vector<4x16x16xf32> to vector<4x16xf32>
    %14 = vector.shape_cast %13 : vector<4x16xf32> to vector<4x16x1xf32>
    %15 = arith.maximumf %12, %14 : vector<4x16x1xf32>
    %16 = arith.subf %12, %15 : vector<4x16x1xf32>
    %17 = math.exp %16 : vector<4x16x1xf32>
    %18 = vector.broadcast %15 : vector<4x16x1xf32> to vector<4x16x16xf32>
    %19 = arith.subf %11, %18 : vector<4x16x16xf32>
    %20 = math.exp %19 : vector<4x16x16xf32>
    %c0_17 = arith.constant 0 : index
    %c0_18 = arith.constant 0 : index
    %c0_19 = arith.constant 0 : index
    %21 = vector.load %arg8[%c0_17, %c0_18, %c0_19] : memref<4x16x1xf32, #tpu.memory_space<vmem>>, vector<4x16x1xf32>
    %22 = arith.mulf %17, %21 : vector<4x16x1xf32>
    %cst_20 = arith.constant dense<0.000000e+00> : vector<4x16xf32>
    %23 = vector.multi_reduction <add>, %20, %cst_20 [2] : vector<4x16x16xf32> to vector<4x16xf32>
    %24 = vector.shape_cast %23 : vector<4x16xf32> to vector<4x16x1xf32>
    %25 = arith.addf %22, %24 : vector<4x16x1xf32>
    %c0_21 = arith.constant 0 : index
    %c0_22 = arith.constant 0 : index
    %c0_23 = arith.constant 0 : index
    %26 = vector.load %arg8[%c0_21, %c0_22, %c0_23] : memref<4x16x1xf32, #tpu.memory_space<vmem>>, vector<4x16x1xf32>
    tpu.vector_store %arg8[%c0_21, %c0_22, %c0_23], %25 {strides = array<i32>} : memref<4x16x1xf32, #tpu.memory_space<vmem>>, vector<4x16x1xf32>,
    %cst_24 = arith.constant dense<0.000000e+00> : vector<4x16x8xf32>
    %27 = tpu.matmul %20, %10, %cst_24 {dimension_numbers = #tpu.dot_dimension_numbers<[2], [2], [1], [1], [0, 0, 0, 1, 1, 1], [0], [0]>} : vector<4x16x16xf32>, vector<4x8x16xf32>, vector<4x16x8xf32> -> vector<4x16x8xf32>
    %c0_25 = arith.constant 0 : index
    %c0_26 = arith.constant 0 : index
    %c0_27 = arith.constant 0 : index
    %28 = vector.load %arg9[%c0_25, %c0_26, %c0_27] : memref<4x16x8xf32, #tpu.memory_space<vmem>>, vector<4x16x8xf32>
    %29 = vector.broadcast %17 : vector<4x16x1xf32> to vector<4x16x8xf32>
    %30 = arith.mulf %29, %28 : vector<4x16x8xf32>
    %31 = arith.addf %30, %27 : vector<4x16x8xf32>
    %c0_28 = arith.constant 0 : index
    %c0_29 = arith.constant 0 : index
    %c0_30 = arith.constant 0 : index
    %32 = vector.load %arg9[%c0_28, %c0_29, %c0_30] : memref<4x16x8xf32, #tpu.memory_space<vmem>>, vector<4x16x8xf32>
    tpu.vector_store %arg9[%c0_28, %c0_29, %c0_30], %31 {strides = array<i32>} : memref<4x16x8xf32, #tpu.memory_space<vmem>>, vector<4x16x8xf32>,
    %c0_31 = arith.constant 0 : index
    %c0_32 = arith.constant 0 : index
    %c0_33 = arith.constant 0 : index
    %33 = vector.load %arg7[%c0_31, %c0_32, %c0_33] : memref<4x16x1xf32, #tpu.memory_space<vmem>>, vector<4x16x1xf32>
    tpu.vector_store %arg7[%c0_31, %c0_32, %c0_33], %15 {strides = array<i32>} : memref<4x16x1xf32, #tpu.memory_space<vmem>>, vector<4x16x1xf32>,
    %c0_i32_34 = arith.constant 0 : i32
    %34 = arith.cmpi eq, %arg2, %c0_i32_34 : i32
    %35 = arith.extui %34 : i1 to i32
    %c0_i32_35 = arith.constant 0 : i32
    %36 = arith.cmpi ne, %35, %c0_i32_35 : i32
    scf.if %36 {
      %c0_36 = arith.constant 0 : index
      %c0_37 = arith.constant 0 : index
      %c0_38 = arith.constant 0 : index
      %37 = vector.load %arg8[%c0_36, %c0_37, %c0_38] : memref<4x16x1xf32, #tpu.memory_space<vmem>>, vector<4x16x1xf32>
      %38 = tpu.reciprocal %37 {approx = true} : vector<4x16x1xf32> -> vector<4x16x1xf32>
      %39 = arith.mulf %37, %38 : vector<4x16x1xf32>
      %cst_39 = arith.constant 2.000000e+00 : f32
      %40 = vector.broadcast %cst_39 : f32 to vector<4x16x1xf32>
      %41 = arith.subf %40, %39 : vector<4x16x1xf32>
      %42 = arith.mulf %38, %41 : vector<4x16x1xf32>
      %c0_40 = arith.constant 0 : index
      %c0_41 = arith.constant 0 : index
      %c0_42 = arith.constant 0 : index
      %43 = vector.load %arg9[%c0_40, %c0_41, %c0_42] : memref<4x16x8xf32, #tpu.memory_space<vmem>>, vector<4x16x8xf32>
      %44 = vector.broadcast %42 : vector<4x16x1xf32> to vector<4x16x8xf32>
      %45 = arith.mulf %43, %44 : vector<4x16x8xf32>
      %46 = tpu.transpose %45, [0, 2, 1] : vector<4x16x8xf32> -> vector<4x8x16xf32>
      %c0_43 = arith.constant 0 : index
      %c0_44 = arith.constant 0 : index
      %c0_45 = arith.constant 0 : index
      %47 = vector.load %arg6[%c0_43, %c0_44, %c0_45] : memref<4x8x16xf32, #tpu.memory_space<vmem>>, vector<4x8x16xf32>
      tpu.vector_store %arg6[%c0_43, %c0_44, %c0_45], %46 {strides = array<i32>} : memref<4x8x16xf32, #tpu.memory_space<vmem>>, vector<4x8x16xf32>,
    } else {
    }
    return
  }
  func.func @transform_0(%arg0: i32, %arg1: i32, %arg2: i32) -> (i32, i32, i32, i32) {
    %c0_i32 = arith.constant 0 : i32
    %c0_i32_0 = arith.constant 0 : i32
    %c0_i32_1 = arith.constant 0 : i32
    return %arg0, %c0_i32, %c0_i32_0, %arg1 : i32, i32, i32, i32
  }
  func.func @transform_1(%arg0: i32, %arg1: i32, %arg2: i32) -> (i32, i32, i32, i32) {
    %c1_i32 = arith.constant 1 : i32
    %c0_i32 = arith.constant 0 : i32
    %c0_i32_0 = arith.constant 0 : i32
    return %arg0, %c1_i32, %c0_i32, %arg2 : i32, i32, i32, i32
  }
  func.func @transform_2(%arg0: i32, %arg1: i32, %arg2: i32) -> (i32, i32, i32, i32) {
    %c2_i32 = arith.constant 2 : i32
    %c0_i32 = arith.constant 0 : i32
    %c0_i32_0 = arith.constant 0 : i32
    return %arg0, %c2_i32, %c0_i32, %arg2 : i32, i32, i32, i32
  }
  func.func @transform_3(%arg0: i32, %arg1: i32, %arg2: i32) -> (i32, i32, i32) {
    %c0_i32 = arith.constant 0 : i32
    %c0_i32_0 = arith.constant 0 : i32
    return %arg0, %c0_i32, %arg1 : i32, i32, i32
  }
}

</mosaic_0001>

<bundles_post_ra>
// kernel: tpu_custom_call.1
= control target key start
LH: loop header
LB: loop body
LE: loop exit
PB: predicated region body
PF: predicated region fallthrough
CT: control target
= control target key end

     0   :  { %8 = vsyncpa [#allocation7], 0  ;;  %s1915_s0 = inlined_call_operand.hbm [shape: f32[4,3,8,16], index: 0, kind: input, shape index: {}]   ;;  %s1916_s1 = inlined_call_operand.hbm [shape: f32[4,3,8,16], index: 1, kind: input, shape index: {}]   ;;  %s1917_s2 = inlined_call_operand.hbm [shape: f32[4,3,8,16], index: 2, kind: input, shape index: {}]   ;;  %s1918_s3 = inlined_call_operand.hbm [shape: f32[4,8,16], index: 3, kind: output, shape index: {}]  }
   0x1   :  { %9 = vsyncpa [#allocation10], 0 }
   0x2   :  { %10 = vsyncpa [#allocation8], 0  ;;  %s28_s14 = scalar_lea.hbm %s1916_s1, 128  ;;  %s1644_s15 = smov [#allocation9]  }
   0x3   :  { %s29_s16 = sshll.u32 %s1644_s15, 4  ;;  %s1645_s17 = smov [#allocation6]   ;;  %s30_s16 = int_to_ptr.vmem [resolvable:$true] %s29_s16 }
   0x4   :  { %s16_s18 = sshll.u32 %s1645_s17, 4  ;;  %s1562_s19 = scalar_lea.vmem %s30_s16, 512  ;;  %s17_s18 = int_to_ptr.vmem [resolvable:$true] %s16_s18 }
   0x5   :  { %p1563_p0 = scmp.ne.s32.totalorder %s30_s16, %s1562_s19  ;;  %p1567_p1 = scmp.lt.s32.totalorder %s30_s16, %s30_s16 }
   0x6   :  { %p1568_p2 = scmp.lt.s32.totalorder %s1562_s19, %s1562_s19 }
   0x8   :  { %p1569_p3 = por %p1568_p2, %p1567_p1 }
   0xa   :  { %p1570_p4 = pnand %p1569_p3, %p1563_p0 }
   0xc   :  { %1573 = shalt.err (!%p1570_p4)
}
   0xd   :  { %s1646_s20 = smov 384   ;;  %s1647_s21 = smov 128  }
   0xe   :  { %s1648_s22 = smov 8   ;;  %s1583_s1 = scalar_lea.vmem %s17_s18, 512 }
   0xf   :  { %35 = dma.hbm_to_vmem [thread:$0]  %s28_s14, 512, %s30_s16, [#allocation10], %s1646_s20, %s1647_s21, %s1648_s22  }
  0x10   :  { %p1584_p5 = scmp.ne.s32.totalorder %s17_s18, %s1583_s1  ;;  %p1588_p6 = scmp.lt.s32.totalorder %s17_s18, %s17_s18 }
  0x11   :  { %p1589_p7 = scmp.lt.s32.totalorder %s1583_s1, %s1583_s1 }
  0x13   :  { %p1590_p8 = por %p1589_p7, %p1588_p6 }
  0x15   :  { %p1591_p9 = pnand %p1590_p8, %p1584_p5 }
  0x17   :  { %1594 = shalt.err (!%p1591_p9)
}
  0x18   :  { %22 = dma.hbm_to_vmem [thread:$0]  %s1915_s0, 512, %s17_s18, [#allocation7], %s1646_s20, %s1647_s21, %s1648_s22  }
  0x19   :  { %s41_s27 = scalar_lea.hbm %s1917_s2, 256  ;;  %s1649_s28 = smov [#allocation11]  }
  0x1a   :  { %s42_s29 = sshll.u32 %s1649_s28, 4  ;;  %s43_s29 = int_to_ptr.vmem [resolvable:$true] %s42_s29 }
  0x1b   :  { %s1605_s30 = scalar_lea.vmem %s43_s29, 512  ;;  %p1610_p11 = scmp.lt.s32.totalorder %s43_s29, %s43_s29 }
  0x1c   :  { %p1606_p10 = scmp.ne.s32.totalorder %s43_s29, %s1605_s30  ;;  %p1611_p12 = scmp.lt.s32.totalorder %s1605_s30, %s1605_s30 }
  0x1e   :  { %p1612_p13 = por %p1611_p12, %p1610_p11 }
  0x20   :  { %p1613_p0 = pnand %p1612_p13, %p1606_p10 }
  0x22   :  { %1616 = shalt.err (!%p1613_p0)
}
  0x23   :  { %48 = dma.hbm_to_vmem [thread:$0]  %s41_s27, 512, %s43_s29, [#allocation10], %s1646_s20, %s1647_s21, %s1648_s22  }
  0x24   :  { %1638 = dma.done.wait [#allocation7], 512  }
  0x25   :  { %1639 = vsyncadd [#allocation7], 4294966784 }
  0x26   :  { %1640 = dma.done.wait [#allocation10], 1024  }
  0x27   :  { %1641 = vsyncadd [#allocation10], 4294966272  ;;  %v88_v0 = vld [vmem:[#allocation6] sm:$0xff]  ;;  %v90_v1 = vld [vmem:[#allocation6 + $0x10] sm:$0xff]  ;;  %vm79_vm0 = vcmask 64512   ;;  %vm62_vm1 = vcmask 7168  }
  0x28   :  { %v92_v2 = vmul.f32 0.35355338, %v88_v0  ;;  %v94_v3 = vmul.f32 0.35355338, %v90_v1  ;;  %v89_v4 = vld [vmem:[#allocation6 + $0x8] sm:$0xff]  ;;  %v91_v5 = vld [vmem:[#allocation6 + $0x18] sm:$0xff] }
  0x29   :  { %v96_v6 = vld [vmem:[#allocation9] sm:$0xff]  ;;  %v93_v7 = vmul.f32 0.35355338, %v89_v4  ;;  %v95_v8 = vmul.f32 0.35355338, %v91_v5  ;;  %v98_v9 = vld [vmem:[#allocation9 + $0x10] sm:$0xff] }
  0x2a   :  { %104 = vxpose.xlu0.b32.start.end [1/1] (short) (narrow) %v92_v2, 16  ;;  %331 = vxpose.xlu1.b32.start.end [1/1] (short) (narrow) %v94_v3, 16  ;;  %v97_v10 = vld [vmem:[#allocation9 + $0x8] sm:$0xff]  ;;  %v99_v11 = vld [vmem:[#allocation9 + $0x18] sm:$0xff]  ;;  %v1650_v20 = vmov -inf   ;;  %vm565_vm2 = vcmask 130048  }
  0x2b   :  { %1452 = vmatprep.subr.mxu0 %v96_v6  ;;  %1457 = vmatprep.subr.mxu1 %v97_v10  ;;  %64 = vst.msk [vmem:[#allocation2 + $0x8] sm:$0xff] %vm62_vm1, %v1650_v20  ;;  %63 = vst.msk [vmem:[#allocation2] sm:$0xff] %vm62_vm1, %v1650_v20  ;;  %v1651_v34 = vmov 0   ;;  %v1652_v38 = vmov 0.0   ;;  %v100_v0 = vld [vmem:[#allocation11] sm:$0xff]  ;;  %s1653_s0 = smov [#allocation12]  }
  0x2c   :  { %1453 = vmatpush3.msra.mxu0 %v96_v6  ;;  %1458 = vmatpush3.msra.mxu1 %v97_v10  ;;  %65 = vst.msk [vmem:[#allocation2 + $0x10] sm:$0xff] %vm62_vm1, %v1650_v20  ;;  %66 = vst.msk [vmem:[#allocation2 + $0x18] sm:$0xff] %vm62_vm1, %v1650_v20  ;;  %v103_v10 = vld [vmem:[#allocation11 + $0x18] sm:$0xff]  ;;  %s1395_s2 = sshll.u32 %s1653_s0, 4  ;;  %s1396_s2 = int_to_ptr.vmem [resolvable:$true] %s1395_s2 }
  0x2d   :  { %1462 = vmatprep.subr.mxu0 %v98_v9  ;;  %1467 = vmatprep.subr.mxu1 %v99_v11  ;;  %67 = vst.msk [vmem:[#allocation2 + $0x20] sm:$0xff] %vm62_vm1, %v1650_v20  ;;  %68 = vst.msk [vmem:[#allocation2 + $0x28] sm:$0xff] %vm62_vm1, %v1650_v20  ;;  %s1618_s4 = scalar_lea.vmem %s1396_s2, 512  ;;  %p1623_p2 = scmp.lt.s32.totalorder %s1396_s2, %s1396_s2 }
  0x2e   :  { %69 = vst.msk [vmem:[#allocation2 + $0x30] sm:$0xff] %vm62_vm1, %v1650_v20  ;;  %70 = vst.msk [vmem:[#allocation2 + $0x38] sm:$0xff] %vm62_vm1, %v1650_v20  ;;  %p1619_p1 = scmp.ne.s32.totalorder %s1396_s2, %s1618_s4  ;;  %p1624_p3 = scmp.lt.s32.totalorder %s1618_s4, %s1618_s4 }
  0x2f   :  { %218 = vxpose.xlu0.b32.start.end [1/1] (short) (narrow) %v93_v7, 16  ;;  %444 = vxpose.xlu1.b32.start.end [1/1] (short) (narrow) %v95_v8, 16  ;;  %72 = vst.msk [vmem:[#allocation3 + $0x8] sm:$0xff] %vm62_vm1, %v1652_v38  ;;  %71 = vst.msk [vmem:[#allocation3] sm:$0xff] %vm62_vm1, %v1652_v38  ;;  %v101_v8 = vld [vmem:[#allocation11 + $0x8] sm:$0xff] }
  0x30   :  { %73 = vst.msk [vmem:[#allocation3 + $0x10] sm:$0xff] %vm62_vm1, %v1652_v38  ;;  %74 = vst.msk [vmem:[#allocation3 + $0x18] sm:$0xff] %vm62_vm1, %v1652_v38  ;;  %p1625_p4 = por %p1624_p3, %p1623_p2 }
  0x31   :  { %75 = vst.msk [vmem:[#allocation3 + $0x20] sm:$0xff] %vm62_vm1, %v1652_v38  ;;  %76 = vst.msk [vmem:[#allocation3 + $0x28] sm:$0xff] %vm62_vm1, %v1652_v38 }
  0x32   :  { %77 = vst.msk [vmem:[#allocation3 + $0x30] sm:$0xff] %vm62_vm1, %v1652_v38  ;;  %78 = vst.msk [vmem:[#allocation3 + $0x38] sm:$0xff] %vm62_vm1, %v1652_v38  ;;  %v1753_v39 = vld [vmem:[#allocation2 + $0x8] sm:$0xff]  ;;  %v1755_v41 = vld [vmem:[#allocation2] sm:$0xff]  ;;  %p1626_p5 = pnand %p1625_p4, %p1619_p1 }
  0x33   :  { %80 = vst.msk [vmem:[#allocation4] sm:$0xff] %vm79_vm0, %v1652_v38  ;;  %81 = vst.msk [vmem:[#allocation4 + $0x8] sm:$0xff] %vm79_vm0, %v1652_v38  ;;  %v1775_v49 = vld [vmem:[#allocation2 + $0x18] sm:$0xff]  ;;  %v1789_v56 = vld [vmem:[#allocation2 + $0x10] sm:$0xff] }
  0x34   :  { %82 = vst.msk [vmem:[#allocation4 + $0x10] sm:$0xff] %vm79_vm0, %v1652_v38  ;;  %83 = vst.msk [vmem:[#allocation4 + $0x18] sm:$0xff] %vm79_vm0, %v1652_v38  ;;  %v1768_v46 = vld [vmem:[#allocation2 + $0x20] sm:$0xff]  ;;  %v1780_v52 = vld [vmem:[#allocation2 + $0x28] sm:$0xff] }
  0x35   :  { %84 = vst.msk [vmem:[#allocation4 + $0x20] sm:$0xff] %vm79_vm0, %v1652_v38  ;;  %85 = vst.msk [vmem:[#allocation4 + $0x28] sm:$0xff] %vm79_vm0, %v1652_v38  ;;  %v1806_v62 = vld [vmem:[#allocation2 + $0x30] sm:$0xff]  ;;  %v1818_v3 = vld [vmem:[#allocation2 + $0x38] sm:$0xff] }
  0x36   :  { %86 = vst.msk [vmem:[#allocation4 + $0x30] sm:$0xff] %vm79_vm0, %v1652_v38  ;;  %87 = vst.msk [vmem:[#allocation4 + $0x38] sm:$0xff] %vm79_vm0, %v1652_v38 }
  0x4d   :  { %1503 = vset.pattern.permute.xlu1 %v1651_v34 }
  0x58   :  { %1502 = vset.pattern.permute.xlu0 %v1651_v34 }
  0xa6   :  { %v120_v12 = vpop.trf.xlu0  ;;  %v347_v13 = vpop.trf.xlu1 }
  0xa7   :  { %1454 = vmatprep.mubr.msk.f32.mxu0 %vm79_vm0, %v120_v12 }
  0xaa   :  { %v121_v14 = vpop.trf.xlu0  ;;  %v348_v15 = vpop.trf.xlu1 }
  0xab   :  { %1455 = vmatmul.mubr.msk.f32.vlgmr.msra.gmra.mxu0 %vm79_vm0, %v121_v14 }
  0xac   :  { %1463 = vmatpush3.msra.mxu0 %v98_v9  ;;  %1464 = vmatprep.mubr.msk.f32.mxu0 %vm79_vm0, %v347_v13  ;;  %v102_v9 = vld [vmem:[#allocation11 + $0x10] sm:$0xff] }
  0xad   :  { %1472 = vmatprep.subr.msk.mxu0 %vm565_vm2, %v100_v0 }
  0xae   :  { %v234_v16 = vpop.trf.xlu0  ;;  %v460_v17 = vpop.trf.xlu1 }
  0xaf   :  { %1459 = vmatprep.mubr.msk.f32.mxu1 %vm79_vm0, %v234_v16  ;;  %1465 = vmatmul.mubr.msk.f32.vlgmr.msra.gmra.mxu0 %vm79_vm0, %v348_v15 }
  0xb0   :  { %1473 = vmatpush3.xpose.msk.msra.mxu0 %vm565_vm2, %v100_v0 }
  0xb1   :  { %1482 = vmatprep.subr.msk.mxu0 %vm565_vm2, %v102_v9 }
  0xb2   :  { %v235_v18 = vpop.trf.xlu0  ;;  %v461_v19 = vpop.trf.xlu1 }
  0xb3   :  { %1460 = vmatmul.mubr.msk.f32.vlgmr.msra.gmra.mxu1 %vm79_vm0, %v235_v18 }
  0xb4   :  { %1468 = vmatpush3.msra.mxu1 %v99_v11  ;;  %1469 = vmatprep.mubr.msk.f32.mxu1 %vm79_vm0, %v460_v17 }
  0xb5   :  { %1477 = vmatprep.subr.msk.mxu1 %vm565_vm2, %v101_v8 }
  0xb7   :  { %1470 = vmatmul.mubr.msk.f32.vlgmr.msra.gmra.mxu1 %vm79_vm0, %v461_v19 }
  0xb8   :  { %1478 = vmatpush3.xpose.msk.msra.mxu1 %vm565_vm2, %v101_v8 }
  0xb9   :  { %1487 = vmatprep.subr.msk.mxu1 %vm565_vm2, %v103_v10 }
 0x16b   :  { %v1705_v21 = vpop.f32.mrf.mxu0 }
 0x16c   :  { %v569_v22 = vsel %vm565_vm2, %v1705_v21, -inf }
 0x16d   :  { %570 = vmax.xlane.f32.xlu1 %v569_v22  ;;  %v1709_v23 = vpop.f32.mrf.mxu0 }
 0x16e   :  { %v566_v24 = vsel %vm565_vm2, %v1709_v23, -inf }
 0x16f   :  { %567 = vmax.xlane.f32.xlu0 %v566_v24  ;;  %v1713_v25 = vpop.f32.mrf.mxu0 }
 0x170   :  { %v581_v30 = vsel %vm565_vm2, %v1713_v25, -inf }
 0x171   :  { %v1715_v26 = vpop.f32.mrf.mxu0 }
 0x172   :  { %v578_v27 = vsel %vm565_vm2, %v1715_v26, -inf }
 0x173   :  { %579 = vmax.xlane.f32.xlu0 %v578_v27  ;;  %v1719_v28 = vpop.f32.mrf.mxu1 }
 0x174   :  { %v575_v29 = vsel %vm565_vm2, %v1719_v28, -inf }
 0x175   :  { %576 = vmax.xlane.f32.xlu1 %v575_v29  ;;  %v1725_v31 = vpop.f32.mrf.mxu1 }
 0x176   :  { %v572_v33 = vsel %vm565_vm2, %v1725_v31, -inf }
 0x177   :  { %582 = vmax.xlane.f32.xlu0 %v581_v30  ;;  %v1727_v32 = vpop.f32.mrf.mxu1 }
 0x178   :  { %v587_v37 = vsel %vm565_vm2, %v1727_v32, -inf }
 0x179   :  { %573 = vmax.xlane.f32.xlu1 %v572_v33  ;;  %v1731_v35 = vpop.f32.mrf.mxu1 }
 0x17a   :  { %v584_v36 = vsel %vm565_vm2, %v1731_v35, -inf }
 0x17d   :  { %585 = vmax.xlane.f32.xlu1 %v584_v36 }
 0x181   :  { %588 = vmax.xlane.f32.xlu1 %v587_v37 }
 0x1f6   :  { %v571_v40 = vpop.xlane.xlu1 %570 }
 0x1f7   :  { %v1758_v42 = vmax.f32 %v1753_v39, %v571_v40 }
 0x1f8   :  { %v568_v43 = vpop.xlane.xlu0 %567 }
 0x1f9   :  { %v599_v44 = vsub.f32 %v1753_v39, %v1758_v42  ;;  %1152 = vst.msk [vmem:[#allocation2 + $0x8] sm:$0xff] %vm62_vm1, %v1758_v42  ;;  %v1765_v45 = vmax.f32 %v1755_v41, %v568_v43  ;;  %629 = vperm.xlu1 %1503, %v1758_v42  }
 0x1fb   :  { %v598_v47 = vsub.f32 %v1755_v41, %v1765_v45  ;;  %1151 = vst.msk [vmem:[#allocation2] sm:$0xff] %vm62_vm1, %v1765_v45  ;;  %624 = vperm.xlu0 %1502, %v1765_v45  }
 0x1fc   :  { %v580_v48 = vpop.xlane.xlu0 %579 }
 0x1fd   :  { %v1778_v50 = vmax.f32 %v1768_v46, %v580_v48  ;;  %v606_v0 = vmul.f32 1.442695, %v598_v47  ;;  %v608_v47 = vmul.f32 1.442695, %v599_v44 }
 0x1fe   :  { %v577_v51 = vpop.xlane.xlu1 %576 }
 0x1ff   :  { %v602_v53 = vsub.f32 %v1768_v46, %v1778_v50  ;;  %1155 = vst.msk [vmem:[#allocation2 + $0x20] sm:$0xff] %vm62_vm1, %v1778_v50  ;;  %v1787_v54 = vmax.f32 %v1775_v49, %v577_v51 }
 0x200   :  { %v583_v55 = vpop.xlane.xlu0 %582 }
 0x201   :  { %v601_v57 = vsub.f32 %v1775_v49, %v1787_v54  ;;  %1154 = vst.msk [vmem:[#allocation2 + $0x18] sm:$0xff] %vm62_vm1, %v1787_v54  ;;  %v1796_v58 = vmax.f32 %v1780_v52, %v583_v55  ;;  %639 = vperm.xlu1 %1503, %v1787_v54   ;;  %v687_v54 = vld [vmem:[#allocation3 + $0x8] sm:$0xff] }
 0x202   :  { %v574_v59 = vpop.xlane.xlu1 %573 }
 0x203   :  { %v603_v60 = vsub.f32 %v1780_v52, %v1796_v58  ;;  %1156 = vst.msk [vmem:[#allocation2 + $0x28] sm:$0xff] %vm62_vm1, %v1796_v58  ;;  %v1804_v61 = vmax.f32 %v1789_v56, %v574_v59  ;;  %v612_v42 = vmul.f32 1.442695, %v601_v57 }
 0x205   :  { %v600_v63 = vsub.f32 %v1789_v56, %v1804_v61  ;;  %1153 = vst.msk [vmem:[#allocation2 + $0x10] sm:$0xff] %vm62_vm1, %v1804_v61  ;;  %634 = vperm.xlu1 %1503, %v1804_v61  }
 0x206   :  { %v586_v1 = vpop.xlane.xlu1 %585 }
 0x207   :  { %v1815_v2 = vmax.f32 %v1806_v62, %v586_v1 }
 0x209   :  { %649 = vperm.xlu1 %1503, %v1796_v58   ;;  %v604_v4 = vsub.f32 %v1806_v62, %v1815_v2  ;;  %1157 = vst.msk [vmem:[#allocation2 + $0x30] sm:$0xff] %vm62_vm1, %v1815_v2 }
 0x20a   :  { %v589_v5 = vpop.xlane.xlu1 %588 }
 0x20b   :  { %v1826_v6 = vmax.f32 %v1818_v3, %v589_v5  ;;  %v614_v5 = vmul.f32 1.442695, %v602_v53  ;;  %v618_v41 = vmul.f32 1.442695, %v604_v4  ;;  %v616_v53 = vmul.f32 1.442695, %v603_v60 }
 0x20c   :  { %v686_v4 = vld [vmem:[#allocation3] sm:$0xff] }
 0x20d   :  { %644 = vperm.xlu1 %1503, %v1778_v50   ;;  %v605_v7 = vsub.f32 %v1818_v3, %v1826_v6  ;;  %1158 = vst.msk [vmem:[#allocation2 + $0x38] sm:$0xff] %vm62_vm1, %v1826_v6 }
 0x20f   :  { %v620_v52 = vmul.f32 1.442695, %v605_v7  ;;  %v689_v7 = vld [vmem:[#allocation3 + $0x18] sm:$0xff] }
 0x211   :  { %654 = vperm.xlu1 %1503, %v1815_v2   ;;  %v610_v2 = vmul.f32 1.442695, %v600_v63 }
 0x215   :  { %659 = vperm.xlu1 %1503, %v1826_v6  }
 0x274   :  { %v630_v11 = vpop.permute.xlu1 %629 }
 0x275   :  { %v663_v12 = vsub.f32 %v1705_v21, %v630_v11 }
 0x276   :  { %v625_v13 = vpop.permute.xlu0 %624 }
 0x277   :  { %v672_v14 = vmul.f32 1.442695, %v663_v12  ;;  %v662_v15 = vsub.f32 %v1709_v23, %v625_v13 }
 0x279   :  { %1504 = vpow2.f32 %v672_v14  ;;  %v670_v16 = vmul.f32 1.442695, %v662_v15  ;;  %v688_v14 = vld [vmem:[#allocation3 + $0x10] sm:$0xff] }
 0x27b   :  { %1506 = vpow2.f32 %v670_v16 }
 0x27c   :  { %v640_v17 = vpop.permute.xlu1 %639 }
 0x27d   :  { %v665_v18 = vsub.f32 %v1719_v28, %v640_v17 }
 0x27f   :  { %v676_v19 = vmul.f32 1.442695, %v665_v18 }
 0x280   :  { %v635_v20 = vpop.permute.xlu1 %634 }
 0x281   :  { %1508 = vpow2.f32 %v676_v19  ;;  %v664_v22 = vsub.f32 %v1725_v31, %v635_v20  ;;  %v691_v19 = vld [vmem:[#allocation3 + $0x28] sm:$0xff] }
 0x283   :  { %v674_v24 = vmul.f32 1.442695, %v664_v22 }
 0x284   :  { %v650_v27 = vpop.permute.xlu1 %649 }
 0x285   :  { %1510 = vpow2.f32 %v674_v24  ;;  %v667_v21 = vsub.f32 %v1713_v25, %v650_v27 }
 0x286   :  { %v1505_v29 = vpop.eup %1504 }
 0x287   :  { %v680_v30 = vmul.f32 1.442695, %v667_v21  ;;  %v705_v23 = vsel %vm565_vm2, %v1505_v29, 0.0  ;;  %v690_v21 = vld [vmem:[#allocation3 + $0x20] sm:$0xff] }
 0x288   :  { %v1507_v33 = vpop.eup %1506  ;;  %706 = vadd.xlane.f32.xlu1 %v705_v23  ;;  %v645_v34 = vpop.permute.xlu1 %644 }
 0x289   :  { %1512 = vpow2.f32 %v680_v30  ;;  %v666_v28 = vsub.f32 %v1715_v26, %v645_v34  ;;  %1474 = vmatprep.mubr.msk.f32.mxu0 %vm565_vm2, %v1507_v33  ;;  %v702_v36 = vsel %vm565_vm2, %v1507_v33, 0.0  ;;  %v692_v34 = vld [vmem:[#allocation3 + $0x30] sm:$0xff] }
 0x28a   :  { %1475 = vmatmul.mubr.msk.f32.vlgmr.msra.gmra.mxu0 %vm565_vm2, %v1505_v29 }
 0x28b   :  { %v678_v31 = vmul.f32 1.442695, %v666_v28  ;;  %1483 = vmatpush3.xpose.msk.msra.mxu0 %vm565_vm2, %v102_v9 }
 0x28c   :  { %v655_v25 = vpop.permute.xlu1 %654  ;;  %703 = vadd.xlane.f32.xlu1 %v702_v36 }
 0x28d   :  { %1514 = vpow2.f32 %v678_v31  ;;  %v668_v37 = vsub.f32 %v1731_v35, %v655_v25 }
 0x28e   :  { %v1509_v38 = vpop.eup %1508 }
 0x28f   :  { %v682_v40 = vmul.f32 1.442695, %v668_v37  ;;  %v711_v43 = vsel %vm565_vm2, %v1509_v38, 0.0 }
 0x290   :  { %v660_v48 = vpop.permute.xlu1 %659  ;;  %712 = vadd.xlane.f32.xlu0 %v711_v43 }
 0x291   :  { %1516 = vpow2.f32 %v682_v40  ;;  %v669_v26 = vsub.f32 %v1727_v32, %v660_v48 }
 0x292   :  { %v1511_v51 = vpop.eup %1510 }
 0x293   :  { %v684_v55 = vmul.f32 1.442695, %v669_v26  ;;  %1479 = vmatprep.mubr.msk.f32.mxu1 %vm565_vm2, %v1511_v51  ;;  %v708_v59 = vsel %vm565_vm2, %v1511_v51, 0.0 }
 0x294   :  { %1480 = vmatmul.mubr.msk.f32.vlgmr.msra.gmra.mxu1 %vm565_vm2, %v1509_v38  ;;  %709 = vadd.xlane.f32.xlu0 %v708_v59  ;;  %v693_v38 = vld [vmem:[#allocation3 + $0x38] sm:$0xff] }
 0x295   :  { %1518 = vpow2.f32 %v684_v55  ;;  %1488 = vmatpush3.xpose.msk.msra.mxu1 %vm565_vm2, %v103_v10 }
 0x296   :  { %v1513_v35 = vpop.eup %1512  ;;  %1520 = vpow2.f32 %v606_v0 }
 0x297   :  { %v717_v1 = vsel %vm565_vm2, %v1513_v35, 0.0  ;;  %1522 = vpow2.f32 %v614_v5 }
 0x298   :  { %718 = vadd.xlane.f32.xlu1 %v717_v1  ;;  %1524 = vpow2.f32 %v618_v41 }
 0x299   :  { %1526 = vpow2.f32 %v608_v47 }
 0x29a   :  { %v1515_v32 = vpop.eup %1514  ;;  %1528 = vpow2.f32 %v616_v53 }
 0x29b   :  { %1484 = vmatprep.mubr.msk.f32.mxu0 %vm565_vm2, %v1515_v32  ;;  %v714_v8 = vsel %vm565_vm2, %v1515_v32, 0.0  ;;  %1530 = vpow2.f32 %v610_v2 }
 0x29c   :  { %715 = vadd.xlane.f32.xlu0 %v714_v8  ;;  %1485 = vmatmul.mubr.msk.f32.vlgmr.msra.gmra.mxu0 %vm565_vm2, %v1513_v35  ;;  %1532 = vpow2.f32 %v612_v42 }
 0x29d   :  { %1534 = vpow2.f32 %v620_v52 }
 0x29e   :  { %v1517_v9 = vpop.eup %1516 }
 0x29f   :  { %1489 = vmatprep.mubr.msk.f32.mxu1 %vm565_vm2, %v1517_v9  ;;  %v720_v45 = vsel %vm565_vm2, %v1517_v9, 0.0 }
 0x2a0   :  { %721 = vadd.xlane.f32.xlu0 %v720_v45 }
 0x2a2   :  { %v1519_v46 = vpop.eup %1518 }
 0x2a3   :  { %1490 = vmatmul.mubr.msk.f32.vlgmr.msra.gmra.mxu1 %vm565_vm2, %v1519_v46  ;;  %v723_v50 = vsel %vm565_vm2, %v1519_v46, 0.0  ;;  %v1521_v62 = vpop.eup %1520 }
 0x2a4   :  { %724 = vadd.xlane.f32.xlu0 %v723_v50  ;;  %v1523_v39 = vpop.eup %1522  ;;  %v694_v3 = vmul.f32 %v1521_v62, %v686_v4 }
 0x2a5   :  { %v1525_v44 = vpop.eup %1524  ;;  %v698_v23 = vmul.f32 %v1523_v39, %v690_v21  ;;  %v1082_v21 = vld [vmem:[#allocation4 + $0x18] sm:$0xff] }
 0x2a6   :  { %v1527_v58 = vpop.eup %1526  ;;  %v700_v36 = vmul.f32 %v1525_v44, %v692_v34 }
 0x2a7   :  { %v1529_v56 = vpop.eup %1528  ;;  %v695_v57 = vmul.f32 %v1527_v58, %v687_v54 }
 0x2a8   :  { %v1531_v60 = vpop.eup %1530  ;;  %v699_v24 = vmul.f32 %v1529_v56, %v691_v19 }
 0x2a9   :  { %1089 = vperm.xlu1 %1503, %v1521_v62   ;;  %v1533_v61 = vpop.eup %1532  ;;  %v696_v17 = vmul.f32 %v1531_v60, %v688_v14  ;;  %v1079_v14 = vld [vmem:[#allocation4] sm:$0xff] }
 0x2aa   :  { %v1535_v49 = vpop.eup %1534  ;;  %v697_v12 = vmul.f32 %v1533_v61, %v689_v7 }
 0x2ab   :  { %v701_v26 = vmul.f32 %v1535_v49, %v693_v38  ;;  %v1083_v38 = vld [vmem:[#allocation4 + $0x20] sm:$0xff] }
 0x2ad   :  { %1109 = vperm.xlu1 %1503, %v1523_v39  }
 0x2b1   :  { %1119 = vperm.xlu1 %1503, %v1525_v44  }
 0x2b5   :  { %1094 = vperm.xlu1 %1503, %v1527_v58  }
 0x2b9   :  { %1114 = vperm.xlu1 %1503, %v1529_v56  }
 0x2ba   :  { %1099 = vperm.xlu0 %1502, %v1531_v60  }
 0x2be   :  { %1104 = vperm.xlu0 %1502, %v1533_v61  }
 0x2c2   :  { %1124 = vperm.xlu0 %1502, %v1535_v49  }
 0x311   :  { %v707_v63 = vpop.xlane.xlu1 %706 }
 0x312   :  { %v727_v10 = vadd.f32 %v707_v63, %v695_v57 }
 0x314   :  { %736 = vst.msk [vmem:[#allocation3 + $0x8] sm:$0xff] %vm62_vm1, %v727_v10 }
 0x315   :  { %v704_v6 = vpop.xlane.xlu1 %703 }
 0x316   :  { %v726_v11 = vadd.f32 %v704_v6, %v694_v3  ;;  %v1080_v6 = vld [vmem:[#allocation4 + $0x8] sm:$0xff] }
 0x318   :  { %735 = vst.msk [vmem:[#allocation3] sm:$0xff] %vm62_vm1, %v726_v11 }
 0x319   :  { %v713_v13 = vpop.xlane.xlu0 %712 }
 0x31a   :  { %v729_v15 = vadd.f32 %v713_v13, %v697_v12 }
 0x31b   :  { %v1163_v16 = vld [vmem:[#allocation3 + $0x8] sm:$0xff] }
 0x31c   :  { %738 = vst.msk [vmem:[#allocation3 + $0x18] sm:$0xff] %vm62_vm1, %v729_v15  ;;  %1536 = vrcp.f32 %v1163_v16 }
 0x31d   :  { %v710_v18 = vpop.xlane.xlu0 %709 }
 0x31e   :  { %v728_v20 = vadd.f32 %v710_v18, %v696_v17 }
 0x31f   :  { %v1162_v22 = vld [vmem:[#allocation3] sm:$0xff] }
 0x320   :  { %737 = vst.msk [vmem:[#allocation3 + $0x10] sm:$0xff] %vm62_vm1, %v728_v20  ;;  %1538 = vrcp.f32 %v1162_v22 }
 0x321   :  { %v719_v27 = vpop.xlane.xlu1 %718 }
 0x322   :  { %v731_v29 = vadd.f32 %v719_v27, %v699_v24 }
 0x323   :  { %v1165_v30 = vld [vmem:[#allocation3 + $0x18] sm:$0xff] }
 0x324   :  { %740 = vst.msk [vmem:[#allocation3 + $0x28] sm:$0xff] %vm62_vm1, %v731_v29  ;;  %1540 = vrcp.f32 %v1165_v30 }
 0x325   :  { %v716_v33 = vpop.xlane.xlu0 %715  ;;  %v1090_v46 = vpop.permute.xlu1 %1089 }
 0x326   :  { %v730_v28 = vadd.f32 %v716_v33, %v698_v23  ;;  %v1127_v20 = vmul.f32 %v1090_v46, %v1079_v14 }
 0x327   :  { %v1164_v31 = vld [vmem:[#allocation3 + $0x10] sm:$0xff] }
 0x328   :  { %739 = vst.msk [vmem:[#allocation3 + $0x20] sm:$0xff] %vm62_vm1, %v730_v28  ;;  %1542 = vrcp.f32 %v1164_v31 }
 0x329   :  { %v1537_v25 = vpop.eup %1536  ;;  %v722_v37 = vpop.xlane.xlu0 %721 }
 0x32a   :  { %v732_v40 = vadd.f32 %v722_v37, %v700_v36  ;;  %v1179_v43 = vmul.f32 %v1537_v25, %v1163_v16  ;;  %v1110_v42 = vpop.permute.xlu1 %1109 }
 0x32b   :  { %v1167_v48 = vld [vmem:[#allocation3 + $0x28] sm:$0xff] }
 0x32c   :  { %741 = vst.msk [vmem:[#allocation3 + $0x30] sm:$0xff] %vm62_vm1, %v732_v40  ;;  %v1187_v51 = vsub.f32 2.0, %v1179_v43  ;;  %1544 = vrcp.f32 %v1167_v48 }
 0x32d   :  { %v1539_v55 = vpop.eup %1538  ;;  %v725_v59 = vpop.xlane.xlu0 %724 }
 0x32e   :  { %v733_v35 = vadd.f32 %v725_v59, %v701_v26  ;;  %v1195_v0 = vmul.f32 %v1537_v25, %v1187_v51  ;;  %v1178_v1 = vmul.f32 %v1539_v55, %v1162_v22  ;;  %v1120_v61 = vpop.permute.xlu1 %1119  ;;  %v1084_v25 = vld [vmem:[#allocation4 + $0x28] sm:$0xff] }
 0x32f   :  { %v1166_v32 = vld [vmem:[#allocation3 + $0x20] sm:$0xff] }
 0x330   :  { %742 = vst.msk [vmem:[#allocation3 + $0x38] sm:$0xff] %vm62_vm1, %v733_v35  ;;  %1217 = vperm.xlu1 %1503, %v1195_v0   ;;  %v1186_v5 = vsub.f32 2.0, %v1178_v1  ;;  %1546 = vrcp.f32 %v1166_v32  ;;  %v1085_v0 = vld [vmem:[#allocation4 + $0x30] sm:$0xff] }
 0x331   :  { %v1541_v8 = vpop.eup %1540 }
 0x332   :  { %v1194_v9 = vmul.f32 %v1539_v55, %v1186_v5  ;;  %v1181_v41 = vmul.f32 %v1541_v8, %v1165_v30  ;;  %v1095_v7 = vpop.permute.xlu1 %1094  ;;  %v1081_v30 = vld [vmem:[#allocation4 + $0x10] sm:$0xff]  ;;  %v1086_v55 = vld [vmem:[#allocation4 + $0x38] sm:$0xff]  ;;  %v1133_v5 = vmul.f32 %v1120_v61, %v1085_v0 }
 0x333   :  { %v1168_v45 = vld [vmem:[#allocation3 + $0x30] sm:$0xff]  ;;  %v1128_v16 = vmul.f32 %v1095_v7, %v1080_v6 }
 0x334   :  { %1212 = vperm.xlu1 %1503, %v1194_v9   ;;  %v1189_v47 = vsub.f32 2.0, %v1181_v41  ;;  %1548 = vrcp.f32 %v1168_v45 }
 0x335   :  { %v1543_v50 = vpop.eup %1542  ;;  %v1100_v17 = vpop.permute.xlu0 %1099 }
 0x336   :  { %v1197_v53 = vmul.f32 %v1541_v8, %v1189_v47  ;;  %v1180_v62 = vmul.f32 %v1543_v50, %v1164_v31  ;;  %v1129_v34 = vmul.f32 %v1100_v17, %v1081_v30  ;;  %v1115_v37 = vpop.permute.xlu1 %1114 }
 0x337   :  { %v1169_v2 = vld [vmem:[#allocation3 + $0x38] sm:$0xff]  ;;  %v1132_v40 = vmul.f32 %v1115_v37, %v1084_v25 }
 0x338   :  { %1227 = vperm.xlu0 %1502, %v1197_v53   ;;  %v1188_v39 = vsub.f32 2.0, %v1180_v62  ;;  %1550 = vrcp.f32 %v1169_v2 }
 0x339   :  { %v1545_v52 = vpop.eup %1544  ;;  %v1105_v29 = vpop.permute.xlu0 %1104 }
 0x33a   :  { %v1196_v44 = vmul.f32 %v1543_v50, %v1188_v39  ;;  %v1183_v60 = vmul.f32 %v1545_v52, %v1167_v48  ;;  %v1130_v23 = vmul.f32 %v1105_v29, %v1082_v21  ;;  %v1131_v48 = vmul.f32 %v1110_v42, %v1083_v38 }
 0x33c   :  { %1222 = vperm.xlu0 %1502, %v1196_v44   ;;  %v1191_v4 = vsub.f32 2.0, %v1183_v60 }
 0x33d   :  { %v1547_v58 = vpop.eup %1546  ;;  %v1125_v59 = vpop.permute.xlu0 %1124 }
 0x33e   :  { %v1182_v56 = vmul.f32 %v1547_v58, %v1166_v32  ;;  %v1199_v12 = vmul.f32 %v1545_v52, %v1191_v4  ;;  %v1134_v1 = vmul.f32 %v1125_v59, %v1086_v55 }
 0x340   :  { %v1190_v49 = vsub.f32 2.0, %v1182_v56 }
 0x341   :  { %v1549_v54 = vpop.eup %1548 }
 0x342   :  { %v1198_v57 = vmul.f32 %v1547_v58, %v1190_v49  ;;  %v1184_v63 = vmul.f32 %v1549_v54, %v1168_v45 }
 0x344   :  { %1232 = vperm.xlu1 %1503, %v1198_v57   ;;  %v1192_v10 = vsub.f32 2.0, %v1184_v63 }
 0x345   :  { %v1551_v3 = vpop.eup %1550 }
 0x346   :  { %v1200_v11 = vmul.f32 %v1549_v54, %v1192_v10  ;;  %v1185_v13 = vmul.f32 %v1551_v3, %v1169_v2 }
 0x348   :  { %1242 = vperm.xlu0 %1502, %v1200_v11   ;;  %1237 = vperm.xlu1 %1503, %v1199_v12   ;;  %v1193_v15 = vsub.f32 2.0, %v1185_v13 }
 0x34a   :  { %v1476_v18 = vpop.f32.mrf.mxu0  ;;  %v1201_v19 = vmul.f32 %v1551_v3, %v1193_v15 }
 0x34b   :  { %v1136_v22 = vadd.f32 %v1476_v18, %v1128_v16 }
 0x34c   :  { %v818_v24 = vpop.f32.mrf.mxu0  ;;  %1247 = vperm.xlu0 %1502, %v1201_v19  }
 0x34d   :  { %1144 = vst.msk [vmem:[#allocation4 + $0x8] sm:$0xff] %vm79_vm0, %v1136_v22  ;;  %v1135_v27 = vadd.f32 %v1127_v20, %v818_v24 }
 0x34f   :  { %1143 = vst.msk [vmem:[#allocation4] sm:$0xff] %vm79_vm0, %v1135_v27 }
 0x354   :  { %v1481_v33 = vpop.f32.mrf.mxu1  ;;  %v1203_v53 = vld [vmem:[#allocation4 + $0x8] sm:$0xff] }
 0x355   :  { %v1138_v28 = vadd.f32 %v1481_v33, %v1130_v23 }
 0x356   :  { %v902_v31 = vpop.f32.mrf.mxu1  ;;  %v1202_v46 = vld [vmem:[#allocation4] sm:$0xff] }
 0x357   :  { %1146 = vst.msk [vmem:[#allocation4 + $0x18] sm:$0xff] %vm79_vm0, %v1138_v28  ;;  %v1137_v36 = vadd.f32 %v1129_v34, %v902_v31 }
 0x359   :  { %1145 = vst.msk [vmem:[#allocation4 + $0x10] sm:$0xff] %vm79_vm0, %v1137_v36 }
 0x35c   :  { %v1486_v43 = vpop.f32.mrf.mxu0 }
 0x35d   :  { %v1140_v26 = vadd.f32 %v1486_v43, %v1132_v40 }
 0x35e   :  { %v986_v51 = vpop.f32.mrf.mxu0  ;;  %v1205_v52 = vld [vmem:[#allocation4 + $0x18] sm:$0xff] }
 0x35f   :  { %1148 = vst.msk [vmem:[#allocation4 + $0x28] sm:$0xff] %vm79_vm0, %v1140_v26  ;;  %v1139_v35 = vadd.f32 %v1131_v48, %v986_v51 }
 0x360   :  { %v1204_v39 = vld [vmem:[#allocation4 + $0x10] sm:$0xff] }
 0x361   :  { %1147 = vst.msk [vmem:[#allocation4 + $0x20] sm:$0xff] %vm79_vm0, %v1139_v35 }
 0x363   :  { %v1491_v32 = vpop.f32.mrf.mxu1 }
 0x364   :  { %v1142_v8 = vadd.f32 %v1491_v32, %v1134_v1 }
 0x365   :  { %v1070_v9 = vpop.f32.mrf.mxu1 }
 0x366   :  { %1150 = vst.msk [vmem:[#allocation4 + $0x38] sm:$0xff] %vm79_vm0, %v1142_v8  ;;  %v1141_v41 = vadd.f32 %v1133_v5, %v1070_v9  ;;  %v1207_v54 = vld [vmem:[#allocation4 + $0x28] sm:$0xff] }
 0x368   :  { %1149 = vst.msk [vmem:[#allocation4 + $0x30] sm:$0xff] %vm79_vm0, %v1141_v41  ;;  %v1206_v56 = vld [vmem:[#allocation4 + $0x20] sm:$0xff] }
 0x36d   :  { %v1209_v6 = vld [vmem:[#allocation4 + $0x38] sm:$0xff] }
 0x36f   :  { %v1208_v4 = vld [vmem:[#allocation4 + $0x30] sm:$0xff] }
 0x3ab   :  { %v1218_v45 = vpop.permute.xlu1 %1217 }
 0x3ac   :  { %v1251_v2 = vmul.f32 %v1218_v45, %v1203_v53 }
 0x3af   :  { %v1213_v47 = vpop.permute.xlu1 %1212 }
 0x3b0   :  { %v1250_v50 = vmul.f32 %v1213_v47, %v1202_v46 }
 0x3b2   :  { %1258 = vxpose.xlu1.b32.start [1/2] (short) (narrow) %v1250_v50, 8 }
 0x3b3   :  { %v1228_v62 = vpop.permute.xlu0 %1227 }
 0x3b4   :  { %v1253_v58 = vmul.f32 %v1228_v62, %v1205_v52 }
 0x3b6   :  { %1259 = vxpose.xlu1.b32.end [2/2] (short) (narrow) %v1251_v2, 8 }
 0x3b7   :  { %v1223_v42 = vpop.permute.xlu0 %1222 }
 0x3b8   :  { %v1252_v44 = vmul.f32 %v1223_v42, %v1204_v39 }
 0x3ba   :  { %1290 = vxpose.xlu0.b32.start [1/2] (short) (narrow) %v1252_v44, 8 }
 0x3be   :  { %1291 = vxpose.xlu0.b32.end [2/2] (short) (narrow) %v1253_v58, 8 }
 0x3bf   :  { %v1233_v60 = vpop.permute.xlu1 %1232 }
 0x3c0   :  { %v1254_v61 = vmul.f32 %v1233_v60, %v1206_v56 }
 0x3c2   :  { %1322 = vxpose.xlu0.b32.start [1/2] (short) (narrow) %v1254_v61, 8 }
 0x3c3   :  { %v1243_v49 = vpop.permute.xlu0 %1242  ;;  %v1238_v57 = vpop.permute.xlu1 %1237 }
 0x3c4   :  { %v1255_v63 = vmul.f32 %v1238_v57, %v1207_v54  ;;  %v1256_v10 = vmul.f32 %v1243_v49, %v1208_v4 }
 0x3c6   :  { %1323 = vxpose.xlu0.b32.end [2/2] (short) (narrow) %v1255_v63, 8 }
 0x3c7   :  { %v1248_v3 = vpop.permute.xlu0 %1247 }
 0x3c8   :  { %v1257_v7 = vmul.f32 %v1248_v3, %v1209_v6 }
 0x3ca   :  { %1354 = vxpose.xlu0.b32.start [1/2] (short) (narrow) %v1256_v10, 8 }
 0x3ce   :  { %1355 = vxpose.xlu0.b32.end [2/2] (short) (narrow) %v1257_v7, 8 }
 0x42e   :  { %v1274_v11 = vpop.trf.xlu1 }
 0x42f   :  { %1386 = vst.msk [vmem:[#allocation12] sm:$0xff] %vm565_vm2, %v1274_v11 }
 0x436   :  { %v1306_v12 = vpop.trf.xlu0 }
 0x437   :  { %1387 = vst.msk [vmem:[#allocation12 + $0x8] sm:$0xff] %vm565_vm2, %v1306_v12 }
 0x43e   :  { %v1338_v13 = vpop.trf.xlu0 }
 0x43f   :  { %1388 = vst.msk [vmem:[#allocation12 + $0x10] sm:$0xff] %vm565_vm2, %v1338_v13 }
 0x446   :  { %v1370_v14 = vpop.trf.xlu0 }
 0x447   :  { %1389 = vst.msk [vmem:[#allocation12 + $0x18] sm:$0xff] %vm565_vm2, %v1370_v14 }
 0x448   :  { %1629 = shalt.err (!%p1626_p5)
}
 0x449   :  { %1401 = dma.vmem_to_hbm [thread:$0]  %s1396_s2, 512, %s1918_s3, [#allocation8], %s1647_s21, %s1647_s21, %s1648_s22  }
 0x44a   :  { %1642 = dma.done.wait [#allocation8], 512  }
 0x44b   :  { %1643 = vsyncadd [#allocation8], 4294966784 }
 0x44c   :  { %1405 = vsyncpa [#allocation7], 1 }
 0x44d   :  { %1406 = vsyncpa [#allocation10], 1 }
 0x44e   :  { %1407 = vsyncpa [#allocation8], 1 }

</bundles_post_ra>
